<compile_context>
chip_gen: v7x
topology: tpu7x:2x2x1
jax: 0.10.0
libtpu: 0.0.40
codegen_flags: <defaults>
</compile_context>

<pallas_src>
import jax
import jax.numpy as jnp
from jax.experimental import pallas as pl
from jax.experimental.pallas import tpu as pltpu

KERNEL_SIZE = 5   # Conv1d kernel_size
STRIDE = 1        # Conv1d default / stride_size (kernel implements stride 1)

MAX_TILE_B = 2048            # rows per grid step (>=1 MiB buffers for small L)
TILE_VMEM_BUDGET = 16 << 20  # conservative across v5e / v6e / v7x


def _round_up(x, m):
    return ((x + m - 1) // m) * m


def conv1d_kernel(x_ref, w_ref, b_ref, o_ref):
    # x_ref: (TILE_B, L)     f32 in VMEM
    # w_ref: (K,)            f32 in SMEM (scalar taps)
    # b_ref: (1,)            f32 in SMEM
    # o_ref: (TILE_B, L_out) f32 in VMEM (exact contract, no padded columns)
    l_out = o_ref.shape[-1]
    xv = x_ref[...]                                   # single hoisted load
    taps = [w_ref[k] for k in range(KERNEL_SIZE)]     # hoisted scalar splats
    bias = b_ref[0]
    # Bias folded into the accumulator init (drops one vadd per tile).
    acc = taps[0] * xv[:, :l_out] + bias
    for k in range(1, KERNEL_SIZE):
        # Static lane-offset slices of the already-loaded value: in-vreg lane
        # shifts (XLU slot), no extra VMEM sweeps, no wrap-around columns.
        acc = acc + taps[k] * xv[:, k:k + l_out]
    o_ref[...] = acc


def my_cnn_forward(x, w, b):
    """Conv1d(1, 1, kernel_size=5, stride=1), valid padding.

    x: (N, 1, L) f32, w: (1, 1, K) f32, b: (1,) f32 -> (N, 1, L-K+1) f32.
    """
    assert STRIDE == 1, "kernel body implements stride 1 only"
    n, c, length = x.shape
    assert c == 1, "MyCNN uses num_channel = 1"
    assert length >= KERNEL_SIZE
    l_out = (length - KERNEL_SIZE) // STRIDE + 1

    x2d = x.reshape(n, length)   # squeeze channel dim (metadata-only)

    # VMEM accounting per batch row: double-buffered input + output tiles plus
    # ~2x tiles of in-kernel temporaries (loaded xv, shifted operands, acc).
    row_in = _round_up(length, 128) * 4
    row_out = _round_up(l_out, 128) * 4
    vmem_per_row = 4 * (row_in + row_out)
    tile_b = max(8, min(MAX_TILE_B,
                        (TILE_VMEM_BUDGET // vmem_per_row) // 8 * 8))
    if n <= 8:
        tile_b = n   # full-dim block; no over-padding for tiny batches
    else:
        # Keep >=2 grid steps: v7x megacore sharding + DMA/compute overlap.
        tile_b = min(tile_b, max(8, _round_up(pl.cdiv(n, 2), 8)))
    grid = (pl.cdiv(n, tile_b),)   # uneven last tile: OOB writes are masked

    out2d = pl.pallas_call(
        conv1d_kernel,
        out_shape=jax.ShapeDtypeStruct((n, l_out), jnp.float32),
        grid=grid,
        in_specs=[
            pl.BlockSpec((tile_b, length), lambda i: (i, 0)),        # x tile
            pl.BlockSpec(memory_space=pltpu.MemorySpace.SMEM),       # weights
            pl.BlockSpec(memory_space=pltpu.MemorySpace.SMEM),       # bias
        ],
        out_specs=pl.BlockSpec((tile_b, l_out), lambda i: (i, 0)),
        compiler_params=pltpu.CompilerParams(
            dimension_semantics=("parallel",),   # 2 TCs on v7x; no-op else
            vmem_limit_bytes=32 * 1024 * 1024,
        ),
        cost_estimate=pl.CostEstimate(
            flops=2 * KERNEL_SIZE * n * l_out,
            transcendentals=0,
            bytes_accessed=n * (length + l_out) * 4 + (KERNEL_SIZE + 1) * 4,
        ),
    )(x2d, w.reshape(KERNEL_SIZE), b)

    return out2d.reshape(n, 1, l_out)


def reference_conv1d(x, w, b):
    """Plain-JAX reference for the same Conv1d (correctness check only)."""
    n, _, length = x.shape
    l_out = length - KERNEL_SIZE + 1
    cols = jnp.stack(
        [x[:, 0, k:k + l_out] for k in range(KERNEL_SIZE)], axis=-1
    )  # (N, L_out, K)
    return (cols @ w.reshape(KERNEL_SIZE) + b[0])[:, None, :]


if __name__ == "__main__":
    key = jax.random.PRNGKey(0)
    kx, kw, kb, kx2 = jax.random.split(key, 4)

    # Shapes consistent with the module: batch=2, channels=1, length=16.
    B, C, L = 2, 1, 16
    # Deterministic parameter init (PyTorch-style uniform(-sqrt(k), sqrt(k)),
    # k = 1 / (in_channels * kernel_size)).
    bound = (1.0 / (C * KERNEL_SIZE)) ** 0.5
    w = jax.random.uniform(kw, (1, 1, KERNEL_SIZE), jnp.float32, -bound, bound)
    b = jax.random.uniform(kb, (1,), jnp.float32, -bound, bound)

    x = jax.random.normal(kx, (B, C, L), dtype=jnp.float32)
    out = jax.block_until_ready(my_cnn_forward(x, w, b))
    ref = reference_conv1d(x, w, b)
    assert out.shape == (B, 1, L - KERNEL_SIZE + 1)
    assert jnp.allclose(out, ref, atol=1e-5, rtol=1e-5)

    # Extra check (per review): L > 128 with L % 128 != 0 exercises the
    # multi-vreg lane-shift path, and a batch not divisible by the tile
    # exercises the masked partial last block.
    B2, L2 = 18, 200
    x2 = jax.random.normal(kx2, (B2, C, L2), dtype=jnp.float32)
    out2 = jax.block_until_ready(my_cnn_forward(x2, w, b))
    ref2 = reference_conv1d(x2, w, b)
    assert out2.shape == (B2, 1, L2 - KERNEL_SIZE + 1)
    assert jnp.allclose(out2, ref2, atol=1e-5, rtol=1e-5)

    print("KERNEL_OK")
</pallas_src>

<mosaic_0001>
module attributes {stable_mosaic.version = 11 : i64} {
  func.func @conv1d_kernel(%arg0: i32, %arg1: memref<2x16xf32, #tpu.memory_space<vmem>>, %arg2: memref<5xf32, #tpu.memory_space<smem>>, %arg3: memref<1xf32, #tpu.memory_space<smem>>, %arg4: memref<2x12xf32, #tpu.memory_space<vmem>>) attributes {dimension_semantics = [#tpu.dimension_semantics<parallel>], iteration_bounds = array<i64: 1>, scalar_prefetch = 0 : i64, scratch_operands = 0 : i64, tpu.core_type = #tpu.core_type<tc>, window_params = [{transform_indices = @transform_0, window_bounds = array<i64: 2, 16>}, {transform_indices = @transform_1, window_bounds = array<i64: 5>}, {transform_indices = @transform_2, window_bounds = array<i64: 1>}, {transform_indices = @transform_3, window_bounds = array<i64: 2, 12>}]} {
    %c0 = arith.constant 0 : index
    %c0_0 = arith.constant 0 : index
    %0 = vector.load %arg1[%c0, %c0_0] : memref<2x16xf32, #tpu.memory_space<vmem>>, vector<2x16xf32>
    %c0_1 = arith.constant 0 : index
    %1 = memref.load %arg2[%c0_1] : memref<5xf32, #tpu.memory_space<smem>>
    %c1 = arith.constant 1 : index
    %2 = memref.load %arg2[%c1] : memref<5xf32, #tpu.memory_space<smem>>
    %c2 = arith.constant 2 : index
    %3 = memref.load %arg2[%c2] : memref<5xf32, #tpu.memory_space<smem>>
    %c3 = arith.constant 3 : index
    %4 = memref.load %arg2[%c3] : memref<5xf32, #tpu.memory_space<smem>>
    %c4 = arith.constant 4 : index
    %5 = memref.load %arg2[%c4] : memref<5xf32, #tpu.memory_space<smem>>
    %c0_2 = arith.constant 0 : index
    %6 = memref.load %arg3[%c0_2] : memref<1xf32, #tpu.memory_space<smem>>
    %7 = vector.extract_strided_slice %0 {offsets = [0, 0], sizes = [2, 12], strides = [1, 1]} : vector<2x16xf32> to vector<2x12xf32>
    %8 = vector.broadcast %1 : f32 to vector<2x12xf32>
    %9 = arith.mulf %8, %7 : vector<2x12xf32>
    %10 = vector.broadcast %6 : f32 to vector<2x12xf32>
    %11 = arith.addf %9, %10 : vector<2x12xf32>
    %12 = vector.extract_strided_slice %0 {offsets = [0, 1], sizes = [2, 12], strides = [1, 1]} : vector<2x16xf32> to vector<2x12xf32>
    %13 = vector.broadcast %2 : f32 to vector<2x12xf32>
    %14 = arith.mulf %13, %12 : vector<2x12xf32>
    %15 = arith.addf %11, %14 : vector<2x12xf32>
    %16 = vector.extract_strided_slice %0 {offsets = [0, 2], sizes = [2, 12], strides = [1, 1]} : vector<2x16xf32> to vector<2x12xf32>
    %17 = vector.broadcast %3 : f32 to vector<2x12xf32>
    %18 = arith.mulf %17, %16 : vector<2x12xf32>
    %19 = arith.addf %15, %18 : vector<2x12xf32>
    %20 = vector.extract_strided_slice %0 {offsets = [0, 3], sizes = [2, 12], strides = [1, 1]} : vector<2x16xf32> to vector<2x12xf32>
    %21 = vector.broadcast %4 : f32 to vector<2x12xf32>
    %22 = arith.mulf %21, %20 : vector<2x12xf32>
    %23 = arith.addf %19, %22 : vector<2x12xf32>
    %24 = vector.extract_strided_slice %0 {offsets = [0, 4], sizes = [2, 12], strides = [1, 1]} : vector<2x16xf32> to vector<2x12xf32>
    %25 = vector.broadcast %5 : f32 to vector<2x12xf32>
    %26 = arith.mulf %25, %24 : vector<2x12xf32>
    %27 = arith.addf %23, %26 : vector<2x12xf32>
    %c0_3 = arith.constant 0 : index
    %c0_4 = arith.constant 0 : index
    %28 = vector.load %arg4[%c0_3, %c0_4] : memref<2x12xf32, #tpu.memory_space<vmem>>, vector<2x12xf32>
    tpu.vector_store %arg4[%c0_3, %c0_4], %27 {strides = array<i32>} : memref<2x12xf32, #tpu.memory_space<vmem>>, vector<2x12xf32>,
    return
  }
  func.func @transform_0(%arg0: i32) -> (i32, i32) {
    %c0_i32 = arith.constant 0 : i32
    %c0_i32_0 = arith.constant 0 : i32
    return %arg0, %c0_i32 : i32, i32
  }
  func.func @transform_1(%arg0: i32) -> i32 {
    %c0_i32 = arith.constant 0 : i32
    %c0_i32_0 = arith.constant 0 : i32
    return %c0_i32 : i32
  }
  func.func @transform_2(%arg0: i32) -> i32 {
    %c0_i32 = arith.constant 0 : i32
    %c0_i32_0 = arith.constant 0 : i32
    return %c0_i32 : i32
  }
  func.func @transform_3(%arg0: i32) -> (i32, i32) {
    %c0_i32 = arith.constant 0 : i32
    %c0_i32_0 = arith.constant 0 : i32
    return %arg0, %c0_i32 : i32, i32
  }
}

</mosaic_0001>

<bundles_post_ra>
// kernel: tpu_custom_call.1
= control target key start
LH: loop header
LB: loop body
LE: loop exit
PB: predicated region body
PF: predicated region fallthrough
CT: control target
= control target key end

     0   :  { %9 = vsyncpa [#allocation5], 0  ;;  %s180_s0 = inlined_call_operand.vmem [shape: f32[2,16], index: 0, kind: input, shape index: {}]   ;;  %s181_s1 = inlined_call_operand.vmem [shape: f32[5], index: 1, kind: input, shape index: {}]   ;;  %s182_s2 = inlined_call_operand.<no memory space> [shape: f32[1], index: 2, kind: input, shape index: {}]   ;;  %s183_s3 = inlined_call_operand.hbm [shape: f32[2,12], index: 3, kind: output, shape index: {}]  }
   0x1   :  { %10 = vsyncpa [#allocation4], 0  ;;  %s19_s14 = sshll.u32 %s181_s1, 4  ;;  %s20_s14 = int_to_ptr.vmem [resolvable:$true] %s19_s14 }
   0x2   :  { %s95_s15 = scalar_lea.vmem %s20_s14, 16  ;;  %p100_p1 = scmp.lt.s32.totalorder %s20_s14, %s20_s14 }
   0x3   :  { %p96_p0 = scmp.ne.s32.totalorder %s20_s14, %s95_s15  ;;  %p101_p2 = scmp.lt.s32.totalorder %s95_s15, %s95_s15 }
   0x5   :  { %p102_p3 = por %p101_p2, %p100_p1 }
   0x7   :  { %p103_p4 = pnand %p102_p3, %p96_p0 }
   0x9   :  { %106 = shalt.err (!%p103_p4)
}
   0xa   :  { %s133_s16 = smov [#allocation3]  }
   0xb   :  { %22 = dma.vmem_to_smem %s20_s14, 16, %s133_s16, [#allocation5]  }
   0xc   :  { %129 = dma.done.wait [#allocation5], 16  }
   0xd   :  { %130 = vsyncadd [#allocation5], 4294967280 }
   0xe   :  { %28 = sfence }
   0xf   :  { %s85_s17 = sld [smem:[#allocation3 + $0x1]]  ;;  %s87_s18 = sld [smem:[#allocation3 + $0x3]]  ;;  %v29_v0 = vld [vmem:[%s180_s0] sm:$0x3]  ;;  %v38_v11 = vstv %s182_s2  ;;  %vm68_vm0 = vcmask 91136  }
  0x10   :  { %s86_s19 = sld [smem:[#allocation3 + $0x2]]  ;;  %s88_s20 = sld [smem:[#allocation3 + $0x4]] }
  0x11   :  { %s134_s1 = smov 127   ;;  %s135_s23 = smov 125  }
  0x12   :  { %s136_s24 = smov 126   ;;  %s137_s25 = smov 124  }
  0x13   :  { %s30_s26 = sld [smem:[#allocation3]]  ;;  %s138_s28 = smov [#allocation6]  }
  0x14   :  { %s76_s29 = sshll.u32 %s138_s28, 4  ;;  %s77_s29 = int_to_ptr.vmem [resolvable:$true] %s76_s29 }
  0x15   :  { %v40_v1 = vstv %s85_s17  ;;  %v54_v3 = vstv %s87_s18  ;;  %s107_s30 = scalar_lea.vmem %s77_s29, 32  ;;  %p112_p6 = scmp.lt.s32.totalorder %s77_s29, %s77_s29 }
  0x16   :  { %v41_v2 = vmul.f32 %v40_v1, %v29_v0  ;;  %v55_v4 = vmul.f32 %v54_v3, %v29_v0  ;;  %v47_v5 = vstv %s86_s19  ;;  %v61_v7 = vstv %s88_s20  ;;  %p108_p5 = scmp.ne.s32.totalorder %s77_s29, %s107_s30  ;;  %p113_p7 = scmp.lt.s32.totalorder %s107_s30, %s107_s30 }
  0x17   :  { %v48_v6 = vmul.f32 %v47_v5, %v29_v0  ;;  %v62_v8 = vmul.f32 %v61_v7, %v29_v0 }
  0x18   :  { %43 = vrot.lane.b32.xlu0 %v41_v2, %s134_s1  ;;  %57 = vrot.lane.b32.xlu1 %v55_v4, %s135_s23  ;;  %p114_p8 = por %p113_p7, %p112_p6 }
  0x19   :  { %v36_v9 = vstv %s30_s26 }
  0x1a   :  { %v37_v10 = vmul.f32 %v36_v9, %v29_v0  ;;  %p115_p9 = pnand %p114_p8, %p108_p5 }
  0x1c   :  { %50 = vrot.lane.b32.xlu0 %v48_v6, %s136_s24  ;;  %64 = vrot.lane.b32.xlu1 %v62_v8, %s137_s25  ;;  %v39_v12 = vadd.f32 %v38_v11, %v37_v10 }
  0x8a   :  { %v44_v13 = vpop.permute.xlu0 %43  ;;  %v58_v14 = vpop.permute.xlu1 %57 }
  0x8b   :  { %v46_v15 = vadd.f32 %v44_v13, %v39_v12 }
  0x8e   :  { %v51_v16 = vpop.permute.xlu0 %50  ;;  %v65_v18 = vpop.permute.xlu1 %64 }
  0x8f   :  { %v53_v17 = vadd.f32 %v51_v16, %v46_v15 }
  0x91   :  { %v60_v19 = vadd.f32 %v58_v14, %v53_v17 }
  0x93   :  { %v67_v20 = vadd.f32 %v65_v18, %v60_v19 }
  0x95   :  { %69 = vst.msk [vmem:[#allocation6] sm:$0x3] %vm68_vm0, %v67_v20 }
  0x96   :  { %118 = shalt.err (!%p115_p9)
}
  0x97   :  { %s119_s5 = scalar_lea.hbm %s183_s3, 32 }
  0x98   :  { %p120_p10 = scmp.ne.s32.totalorder %s183_s3, %s119_s5  ;;  %p123_p11 = scmp.lt.u32.totalorder %s119_s5, %s183_s3 }
  0x9a   :  { %p125_p12 = pnand %p123_p11, %p120_p10 }
  0x9c   :  { %128 = shalt.err (!%p125_p12)
}
  0x9d   :  { %79 = dma.vmem_to_hbm [thread:$0]  %s77_s29, 32, %s183_s3, [#allocation4]  }
  0x9e   :  { %131 = dma.done.wait [#allocation4], 32  }
  0x9f   :  { %132 = vsyncadd [#allocation4], 4294967264 }
  0xa0   :  { %83 = vsyncpa [#allocation4], 1 }
  0xa1   :  { %84 = vsyncpa [#allocation5], 1 }

</bundles_post_ra>
